<compile_context>
chip_gen: v7x
topology: tpu7x:2x2x1
jax: 0.10.0
libtpu: 0.0.40
codegen_flags: <defaults>
</compile_context>

<pallas_src>
import jax
import jax.numpy as jnp
from jax.experimental import pallas as pl
from jax.experimental.pallas import tpu as pltpu


def _power_iter_kernel(w_ref, u_ref, wsn_ref, u_out_ref, v_out_ref):
    # w_ref : (Cout, CKK) f32  -- weight_bar flattened like w.view(height, -1)
    # u_ref : (Cout, 1)   f32  -- the `weight_u` buffer
    # outs  : wsn (Cout, CKK) bf16, u_new (Cout, 1) f32, v_new (1, CKK) f32
    w = w_ref[...]
    u0 = u_ref[...]

    # One power-iteration step, all f32 on the VPU/XLU (tiny: 4 x 36).
    # TODO(synk): at production Cout/CKK switch these matvecs to jnp.dot MXU
    # passes to keep the VALU/XLU slots clear.
    v = jnp.sum(w * u0, axis=0, keepdims=True)                        # (1, CKK)
    v = v / (jnp.sqrt(jnp.sum(v * v, axis=1, keepdims=True)) + 1e-12)
    t = jnp.sum(w * v, axis=1, keepdims=True)                         # (Cout, 1)
    u_new = t / (jnp.sqrt(jnp.sum(t * t, axis=0, keepdims=True)) + 1e-12)
    sigma = jnp.sum(u_new * t, axis=0, keepdims=True)                 # (1, 1)

    # w / sigma as w * approx-reciprocal(sigma): EUP reciprocal (free slot) +
    # one VPU multiply fused with the bf16 cast for the MXU.
    inv_sigma = pl.reciprocal(sigma, approx=True)
    wsn_ref[...] = (w * inv_sigma).astype(wsn_ref.dtype)
    u_out_ref[...] = u_new
    v_out_ref[...] = v


def _conv_kernel(w_ref, b_ref, cols_ref, out_ref):
    # w_ref    : (Cout, CKK)  bf16 -- spectrally normalized weight (VMEM-resident)
    # b_ref    : (Cout, 1)    f32
    # cols_ref : (CKK, HWp)   bf16 -- this image's im2col slab, lane-dense
    # out_ref  : (Cout, HWp)  f32  -- this image's output, lane-dense
    acc = jnp.dot(w_ref[...], cols_ref[...], preferred_element_type=jnp.float32)
    out_ref[...] = acc + b_ref[...]


def spectral_norm_conv2d(x, weight_bar, bias, u, *, pad=1):
    """Forward of SpectralNorm(nn.Conv2d(Cin, Cout, K, stride=1, padding=pad)).

    Returns (out, u_new, v_new): the conv output plus the updated power
    iteration buffers (PyTorch mutates weight_u / weight_v in place).
    """
    N, Cin, H, W = x.shape
    Cout, Cin_w, K, K2 = weight_bar.shape
    assert Cin_w == Cin and K == K2
    Ho = H + 2 * pad - K + 1
    Wo = W + 2 * pad - K + 1
    CKK = Cin * K * K

    # ---- wrapper-side layout plumbing (pure data movement, no FLOPs) ----
    # bf16 BEFORE building the K*K-inflated slab: halves bytes for every XLA op
    # below. Zero padding matches Conv2d's default padding_mode='zeros'.
    xp = jnp.pad(x.astype(jnp.bfloat16),
                 ((0, 0), (0, 0), (pad, pad), (pad, pad)))
    # rows ordered (cin, kh, kw) to match w.view(Cout, -1) of OIHW weights;
    # per-image columns ordered (h, w) so each grid step writes lane-dense.
    taps = [xp[:, :, kh:kh + Ho, kw:kw + Wo]
            for kh in range(K) for kw in range(K)]
    cols = jnp.stack(taps, axis=2)                    # (N, Cin, K*K, Ho, Wo)
    cols = cols.reshape(N, CKK, Ho * Wo)

    HW = Ho * Wo
    HWp = ((HW + 127) // 128) * 128                   # lane-dense (no-op: 256)
    if HWp != HW:
        cols = jnp.pad(cols, ((0, 0), (0, 0), (0, HWp - HW)))

    w_flat = weight_bar.reshape(Cout, CKK).astype(jnp.float32)
    u_col = u.reshape(Cout, 1).astype(jnp.float32)
    b_col = bias.reshape(Cout, 1).astype(jnp.float32)

    vmem = pl.BlockSpec(memory_space=pltpu.MemorySpace.VMEM)

    # ---- kernel 1 (runs once): power iteration + sigma + W * (1/sigma) ----
    w_sn, u_new, v_new = pl.pallas_call(
        _power_iter_kernel,
        out_shape=(jax.ShapeDtypeStruct((Cout, CKK), jnp.bfloat16),
                   jax.ShapeDtypeStruct((Cout, 1), jnp.float32),
                   jax.ShapeDtypeStruct((1, CKK), jnp.float32)),
        in_specs=[vmem, vmem],
        out_specs=(vmem, vmem, vmem),
    )(w_flat, u_col)

    # ---- kernel 2: the wrapped Conv2d as one MXU matmul per image ----
    # grid over the batch, "parallel" -> sharded across v7x's two TensorCores
    # (sequential loop on v5e/v6e). Weight/bias use constant index_maps so they
    # are DMA'd once and stay VMEM-resident across grid steps. Output is
    # emitted directly in (N, Cout, Ho*Wo) -- no wrapper transpose afterwards.
    out_flat = pl.pallas_call(
        _conv_kernel,
        out_shape=jax.ShapeDtypeStruct((N, Cout, HWp), jnp.float32),
        grid=(N,),
        in_specs=[
            pl.BlockSpec((Cout, CKK), lambda n: (0, 0)),          # w_sn
            pl.BlockSpec((Cout, 1), lambda n: (0, 0)),            # bias
            pl.BlockSpec((None, CKK, HWp), lambda n: (n, 0, 0)),  # per-image slab
        ],
        out_specs=pl.BlockSpec((None, Cout, HWp), lambda n: (n, 0, 0)),
        compiler_params=pltpu.CompilerParams(
            dimension_semantics=("parallel",),
            vmem_limit_bytes=32 * 1024 * 1024),
    )(w_sn, b_col, cols)

    # Padded tail lanes (HW -> HWp) are bias-only junk; slice them off before
    # the final reshape. Already NCHW -- no transpose needed.
    out = out_flat[:, :, :HW].reshape(N, Cout, Ho, Wo).astype(x.dtype)
    return out, u_new.reshape(Cout), v_new.reshape(CKK)


def _reference(x, weight_bar, bias, u, pad):
    """Plain-JAX reference matching the PyTorch SpectralNorm(Conv2d) forward."""
    Cout = weight_bar.shape[0]
    wf = weight_bar.reshape(Cout, -1)
    v = jnp.sum(wf * u[:, None], axis=0)               # Wf^T u (exact f32)
    v = v / (jnp.linalg.norm(v) + 1e-12)
    t = jnp.sum(wf * v[None, :], axis=1)                # Wf v
    u_new = t / (jnp.linalg.norm(t) + 1e-12)
    sigma = jnp.sum(u_new * t)
    w_sn = weight_bar / sigma
    y = jax.lax.conv_general_dilated(
        x, w_sn, window_strides=(1, 1), padding=[(pad, pad), (pad, pad)],
        dimension_numbers=("NCHW", "OIHW", "NCHW"))
    return y + bias[None, :, None, None], u_new, v


if __name__ == "__main__":
    N, Cin, Cout, H, W, K, PAD = 2, 4, 4, 16, 16, 3, 1

    key = jax.random.PRNGKey(0)
    kx, kw, kb, ku = jax.random.split(key, 4)
    x = jax.random.normal(kx, (N, Cin, H, W), jnp.float32)

    # PyTorch-like deterministic init
    bound = 1.0 / float((Cin * K * K) ** 0.5)
    w_bar = jax.random.uniform(kw, (Cout, Cin, K, K), jnp.float32, -bound, bound)
    b = jax.random.uniform(kb, (Cout,), jnp.float32, -bound, bound)
    u0 = jax.random.normal(ku, (Cout,), jnp.float32)
    u0 = u0 / (jnp.linalg.norm(u0) + 1e-12)   # _make_params: u = l2normalize(N(0,1))

    out, u_new, v_new = spectral_norm_conv2d(x, w_bar, b, u0, pad=PAD)
    out = jax.block_until_ready(out)

    ref_y, ref_u, ref_v = _reference(x, w_bar, b, u0, PAD)
    assert out.shape == (N, Cout, H, W)
    err = float(jnp.max(jnp.abs(out - ref_y)))
    # bf16 im2col + bf16 weight on the MXU with f32 accumulation, plus the
    # approx EUP reciprocal of sigma -> ~1e-3 abs error vs. the f32 reference.
    assert jnp.allclose(out, ref_y, atol=5e-2, rtol=5e-2), err
    # Power-iteration state is pure f32 in-kernel -> near-exact.
    assert jnp.allclose(u_new, ref_u, atol=1e-4, rtol=1e-4)
    assert jnp.allclose(v_new, ref_v, atol=1e-4, rtol=1e-4)
    print("KERNEL_OK")
</pallas_src>

<mosaic_0001>
module attributes {stable_mosaic.version = 11 : i64} {
  func.func @_power_iter_kernel(%arg0: memref<4x36xf32, #tpu.memory_space<vmem>>, %arg1: memref<4x1xf32, #tpu.memory_space<vmem>>, %arg2: memref<4x36xbf16, #tpu.memory_space<vmem>>, %arg3: memref<4x1xf32, #tpu.memory_space<vmem>>, %arg4: memref<1x36xf32, #tpu.memory_space<vmem>>) attributes {dimension_semantics = [], scalar_prefetch = 0 : i64, scratch_operands = 0 : i64, tpu.core_type = #tpu.core_type<tc>} {
    %c0 = arith.constant 0 : index
    %c0_0 = arith.constant 0 : index
    %0 = vector.load %arg0[%c0, %c0_0] : memref<4x36xf32, #tpu.memory_space<vmem>>, vector<4x36xf32>
    %c0_1 = arith.constant 0 : index
    %c0_2 = arith.constant 0 : index
    %1 = vector.load %arg1[%c0_1, %c0_2] : memref<4x1xf32, #tpu.memory_space<vmem>>, vector<4x1xf32>
    %2 = vector.broadcast %1 : vector<4x1xf32> to vector<4x36xf32>
    %3 = arith.mulf %0, %2 : vector<4x36xf32>
    %cst = arith.constant dense<0.000000e+00> : vector<36xf32>
    %4 = vector.multi_reduction <add>, %3, %cst [0] : vector<4x36xf32> to vector<36xf32>
    %5 = vector.shape_cast %4 : vector<36xf32> to vector<1x36xf32>
    %6 = arith.mulf %5, %5 : vector<1x36xf32>
    %cst_3 = arith.constant dense<0.000000e+00> : vector<1xf32>
    %7 = vector.multi_reduction <add>, %6, %cst_3 [1] : vector<1x36xf32> to vector<1xf32>
    %8 = vector.shape_cast %7 : vector<1xf32> to vector<1x1xf32>
    %9 = math.sqrt %8 : vector<1x1xf32>
    %cst_4 = arith.constant 9.99999996E-13 : f32
    %10 = vector.broadcast %cst_4 : f32 to vector<1x1xf32>
    %11 = arith.addf %9, %10 : vector<1x1xf32>
    %12 = vector.broadcast %11 : vector<1x1xf32> to vector<1x36xf32>
    %13 = arith.divf %5, %12 : vector<1x36xf32>
    %14 = vector.broadcast %13 : vector<1x36xf32> to vector<4x36xf32>
    %15 = arith.mulf %0, %14 : vector<4x36xf32>
    %cst_5 = arith.constant dense<0.000000e+00> : vector<4xf32>
    %16 = vector.multi_reduction <add>, %15, %cst_5 [1] : vector<4x36xf32> to vector<4xf32>
    %17 = vector.shape_cast %16 : vector<4xf32> to vector<4x1xf32>
    %18 = arith.mulf %17, %17 : vector<4x1xf32>
    %cst_6 = arith.constant dense<0.000000e+00> : vector<1xf32>
    %19 = vector.multi_reduction <add>, %18, %cst_6 [0] : vector<4x1xf32> to vector<1xf32>
    %20 = vector.shape_cast %19 : vector<1xf32> to vector<1x1xf32>
    %21 = math.sqrt %20 : vector<1x1xf32>
    %cst_7 = arith.constant 9.99999996E-13 : f32
    %22 = vector.broadcast %cst_7 : f32 to vector<1x1xf32>
    %23 = arith.addf %21, %22 : vector<1x1xf32>
    %24 = vector.broadcast %23 : vector<1x1xf32> to vector<4x1xf32>
    %25 = arith.divf %17, %24 : vector<4x1xf32>
    %26 = arith.mulf %25, %17 : vector<4x1xf32>
    %cst_8 = arith.constant dense<0.000000e+00> : vector<1xf32>
    %27 = vector.multi_reduction <add>, %26, %cst_8 [0] : vector<4x1xf32> to vector<1xf32>
    %28 = vector.shape_cast %27 : vector<1xf32> to vector<1x1xf32>
    %29 = tpu.reciprocal %28 {approx = true} : vector<1x1xf32> -> vector<1x1xf32>
    %30 = vector.broadcast %29 : vector<1x1xf32> to vector<4x36xf32>
    %31 = arith.mulf %0, %30 : vector<4x36xf32>
    %32 = arith.truncf %31 : vector<4x36xf32> to vector<4x36xbf16>
    %c0_9 = arith.constant 0 : index
    %c0_10 = arith.constant 0 : index
    %33 = vector.load %arg2[%c0_9, %c0_10] : memref<4x36xbf16, #tpu.memory_space<vmem>>, vector<4x36xbf16>
    tpu.vector_store %arg2[%c0_9, %c0_10], %32 {strides = array<i32>} : memref<4x36xbf16, #tpu.memory_space<vmem>>, vector<4x36xbf16>,
    %c0_11 = arith.constant 0 : index
    %c0_12 = arith.constant 0 : index
    %34 = vector.load %arg3[%c0_11, %c0_12] : memref<4x1xf32, #tpu.memory_space<vmem>>, vector<4x1xf32>
    tpu.vector_store %arg3[%c0_11, %c0_12], %25 {strides = array<i32>} : memref<4x1xf32, #tpu.memory_space<vmem>>, vector<4x1xf32>,
    %c0_13 = arith.constant 0 : index
    %c0_14 = arith.constant 0 : index
    %35 = vector.load %arg4[%c0_13, %c0_14] : memref<1x36xf32, #tpu.memory_space<vmem>>, vector<1x36xf32>
    tpu.vector_store %arg4[%c0_13, %c0_14], %13 {strides = array<i32>} : memref<1x36xf32, #tpu.memory_space<vmem>>, vector<1x36xf32>,
    return
  }
}

</mosaic_0001>

<bundles_post_ra>
// kernel: tpu_custom_call.1
= control target key start
LH: loop header
LB: loop body
LE: loop exit
PB: predicated region body
PF: predicated region fallthrough
CT: control target
= control target key end

     0   :  { %10 = vsyncpa [#allocation3], 0  ;;  %s251_s0 = inlined_call_operand.vmem [shape: f32[4,36], index: 0, kind: input, shape index: {}]   ;;  %s252_s1 = inlined_call_operand.vmem [shape: f32[4,1], index: 1, kind: input, shape index: {}]   ;;  %s253_s2 = inlined_call_operand.hbm [shape: bf16[4,36], index: 2, kind: output, shape index: {0}]   ;;  %s254_s3 = inlined_call_operand.vmem [shape: f32[4,1], index: 3, kind: output, shape index: {1}]   ;;  %s255_s4 = inlined_call_operand.hbm [shape: f32[1,36], index: 4, kind: output, shape index: {2}]  }
   0x1   :  { %v17_v0 = vld [vmem:[%s252_s1] sm:$0xf] }
   0x2   :  { %11 = vsyncpa [#allocation5], 0  ;;  %v181_v1 = vmov 0   ;;  %v215_v2 = vld [vmem:[%s251_s0] sm:$0xf]  ;;  %vm24_vm0 = vcmask 289792  }
   0x3   :  { %122 = vset.pattern.permute.xlu0 %v181_v1  ;;  %vm33_vm1 = vcmask 293888   ;;  %vm85_vm4 = vcmask 286720   ;;  %s182_s0 = smov [#allocation4]  }
   0x4   :  { %20 = vperm.xlu0 %122, %v17_v0   ;;  %s105_s1 = sshll.u32 %s182_s0, 4  ;;  %s106_s1 = int_to_ptr.vmem [resolvable:$true] %s105_s1 }
   0x5   :  { %s133_s19 = scalar_lea.vmem %s106_s1, 16  ;;  %s137_s20 = scalar_lea.vmem %s106_s1, 32 }
   0x6   :  { %p134_p0 = scmp.ne.s32.totalorder %s106_s1, %s133_s19  ;;  %p138_p1 = scmp.lt.s32.totalorder %s106_s1, %s106_s1 }
   0x7   :  { %p139_p2 = scmp.lt.s32.totalorder %s137_s20, %s133_s19 }
   0x9   :  { %p140_p3 = por %p139_p2, %p138_p1 }
   0xb   :  { %p141_p4 = pnand %p140_p3, %p134_p0 }
  0x83   :  { %v21_v3 = vpop.permute.xlu0 %20 }
  0x84   :  { %v23_v4 = vmul.f32 %v21_v3, %v215_v2 }
  0x86   :  { %v25_v5 = vsel %vm24_vm0, %v23_v4, 0.0 }
  0x87   :  { %v26_v6 = vrot.slane %v25_v5, 4 }
  0x89   :  { %v27_v7 = vadd.f32 %v26_v6, %v25_v5 }
  0x8b   :  { %v28_v8 = vrot.slane %v27_v7, 2 }
  0x8d   :  { %v29_v9 = vadd.f32 %v28_v8, %v27_v7 }
  0x8f   :  { %v30_v10 = vrot.slane %v29_v9, 1 }
  0x91   :  { %v31_v11 = vadd.f32 %v30_v10, %v29_v9 }
  0x93   :  { %v32_v12 = vmul.f32 %v31_v11, %v31_v11 }
  0x95   :  { %v34_v13 = vsel %vm33_vm1, %v32_v12, 0.0 }
  0x96   :  { %35 = vadd.xlane.f32.xlu0 %v34_v13 }
 0x123   :  { %v36_v14 = vpop.xlane.xlu0 %35 }
 0x124   :  { %123 = vrsqrt.f32 %v36_v14  ;;  %vm39_vm2 = vcmp.eq.f32.partialorder %v36_v14, inf  ;;  %v42_v17 = vand.u32 2147483648, %v36_v14  ;;  %vm41_vm3 = vcmp.eq.f32.partialorder %v36_v14, 0.0 }
 0x12e   :  { %v124_v15 = vpop.eup %123 }
 0x12f   :  { %v38_v16 = vmul.f32 %v124_v15, %v36_v14 }
 0x131   :  { %v40_v18 = vsel %vm39_vm2, %v36_v14, %v38_v16 }
 0x132   :  { %v43_v19 = vsel %vm41_vm3, %v42_v17, %v40_v18 }
 0x133   :  { %v44_v20 = vadd.f32 1e-12, %v43_v19 }
 0x135   :  { %125 = vrcp.f32 %v44_v20 }
 0x13f   :  { %v126_v21 = vpop.eup %125 }
 0x140   :  { %v46_v22 = vmul.f32 %v126_v21, %v31_v11 }
 0x142   :  { %v47_v23 = vmul.f32 %v46_v22, %v215_v2  ;;  %86 = vst.msk [vmem:[#allocation4] sm:$0x1] %vm85_vm4, %v46_v22 }
 0x144   :  { %v48_v24 = vsel %vm24_vm0, %v47_v23, 0.0 }
 0x145   :  { %49 = vadd.xlane.f32.xlu1 %v48_v24 }
 0x146   :  { %144 = shalt.err (!%p141_p4)
}
 0x147   :  { %s145_s23 = scalar_lea.hbm %s255_s4, 16 }
 0x148   :  { %p146_p5 = scmp.ne.s32.totalorder %s255_s4, %s145_s23  ;;  %p149_p6 = scmp.lt.u32.totalorder %s145_s23, %s255_s4 }
 0x14a   :  { %p151_p7 = pnand %p149_p6, %p146_p5 }
 0x14c   :  { %154 = shalt.err (!%p151_p7)
}
 0x14d   :  { %108 = dma.vmem_to_hbm [thread:$0]  %s106_s1, 16, %s255_s4, [#allocation5]   ;;  %vm52_vm5 = vcmask 1043456   ;;  %vm83_vm8 = vcmask 3072   ;;  %vm81_vm9 = vcmask 287744  }
 0x14e   :  { %s183_s5 = smov [#allocation2]  }
 0x14f   :  { %s93_s6 = sshll.u32 %s183_s5, 4  ;;  %s94_s6 = int_to_ptr.vmem [resolvable:$true] %s93_s6 }
 0x150   :  { %s155_s7 = scalar_lea.vmem %s94_s6, 32  ;;  %p160_p9 = scmp.lt.s32.totalorder %s94_s6, %s94_s6 }
 0x151   :  { %p156_p8 = scmp.ne.s32.totalorder %s94_s6, %s155_s7  ;;  %p161_p10 = scmp.lt.s32.totalorder %s155_s7, %s155_s7 }
 0x153   :  { %p162_p11 = por %p161_p10, %p160_p9 }
 0x155   :  { %p163_p12 = pnand %p162_p11, %p156_p8 }
 0x1d2   :  { %v50_v25 = vpop.xlane.xlu1 %49 }
 0x1d3   :  { %v51_v26 = vmul.f32 %v50_v25, %v50_v25 }
 0x1d5   :  { %v53_v27 = vsel %vm52_vm5, %v51_v26, 0.0 }
 0x1d6   :  { %v54_v28 = vrot.slane %v53_v27, 4 }
 0x1d8   :  { %v55_v29 = vadd.f32 %v54_v28, %v53_v27 }
 0x1da   :  { %v56_v30 = vrot.slane %v55_v29, 2 }
 0x1dc   :  { %v57_v31 = vadd.f32 %v56_v30, %v55_v29 }
 0x1de   :  { %v58_v32 = vrot.slane %v57_v31, 1 }
 0x1e0   :  { %v59_v33 = vadd.f32 %v58_v32, %v57_v31 }
 0x1e2   :  { %127 = vrsqrt.f32 %v59_v33  ;;  %vm62_vm6 = vcmp.eq.f32.partialorder %v59_v33, inf  ;;  %v65_v36 = vand.u32 2147483648, %v59_v33  ;;  %vm64_vm7 = vcmp.eq.f32.partialorder %v59_v33, 0.0 }
 0x1ec   :  { %v128_v34 = vpop.eup %127 }
 0x1ed   :  { %v61_v35 = vmul.f32 %v128_v34, %v59_v33 }
 0x1ef   :  { %v63_v37 = vsel %vm62_vm6, %v59_v33, %v61_v35 }
 0x1f0   :  { %v66_v38 = vsel %vm64_vm7, %v65_v36, %v63_v37 }
 0x1f1   :  { %v67_v39 = vadd.f32 1e-12, %v66_v38 }
 0x1f3   :  { %129 = vrcp.f32 %v67_v39 }
 0x1fd   :  { %v130_v40 = vpop.eup %129 }
 0x1fe   :  { %v69_v41 = vmul.f32 %v130_v40, %v50_v25 }
 0x200   :  { %v70_v42 = vmul.f32 %v69_v41, %v50_v25  ;;  %84 = vst.msk [vmem:[%s254_s3] sm:$0xf] %vm83_vm8, %v69_v41 }
 0x202   :  { %v71_v43 = vsel %vm52_vm5, %v70_v42, 0.0 }
 0x203   :  { %v72_v44 = vrot.slane %v71_v43, 4 }
 0x205   :  { %v73_v45 = vadd.f32 %v72_v44, %v71_v43 }
 0x207   :  { %v74_v46 = vrot.slane %v73_v45, 2 }
 0x209   :  { %v75_v47 = vadd.f32 %v74_v46, %v73_v45 }
 0x20b   :  { %v76_v48 = vrot.slane %v75_v47, 1 }
 0x20d   :  { %v77_v49 = vadd.f32 %v76_v48, %v75_v47 }
 0x20f   :  { %131 = vrcp.f32 %v77_v49 }
 0x219   :  { %v132_v50 = vpop.eup %131 }
 0x21a   :  { %v79_v51 = vmul.f32 %v132_v50, %v215_v2 }
 0x21c   :  { %v80_v52 = vpack.c.bf16 %v79_v51, %v79_v51 }
 0x21e   :  { %82 = vst.msk [vmem:[#allocation2] sm:$0x3] %vm81_vm9, %v80_v52 }
 0x21f   :  { %166 = shalt.err (!%p163_p12)
}
 0x220   :  { %s167_s9 = scalar_lea.hbm %s253_s2, 32 }
 0x221   :  { %p168_p13 = scmp.ne.s32.totalorder %s253_s2, %s167_s9  ;;  %p171_p0 = scmp.lt.u32.totalorder %s167_s9, %s253_s2 }
 0x223   :  { %p173_p1 = pnand %p171_p0, %p168_p13 }
 0x225   :  { %176 = shalt.err (!%p173_p1)
}
 0x226   :  { %96 = dma.vmem_to_hbm [thread:$0]  %s94_s6, 32, %s253_s2, [#allocation3]  }
 0x227   :  { %177 = dma.done.wait [#allocation3], 32  }
 0x228   :  { %178 = vsyncadd [#allocation3], 4294967264 }
 0x229   :  { %179 = dma.done.wait [#allocation5], 16  }
 0x22a   :  { %180 = vsyncadd [#allocation5], 4294967280 }
 0x22b   :  { %117 = vsyncpa [#allocation3], 1 }
 0x22c   :  { %118 = vsyncpa [#allocation5], 1 }

</bundles_post_ra>
